<compile_context>
chip_gen: v5e
topology: v5e:2x2
jax: 0.10.0
libtpu: 0.0.40
codegen_flags: <defaults>
</compile_context>

<pallas_src>
import math

import jax
import jax.numpy as jnp
from jax.experimental import pallas as pl
from jax.experimental.pallas import tpu as pltpu


def _round_up(x, m):
    return (x + m - 1) // m * m


def _fused_gemm_bias_relu_kernel(p_ref, w_ref, b_ref, o_ref):
    """Single deep-K matmul + bias + ReLU (no K grid axis, no accumulator).

    p_ref : (TM, Kp)   im2col patch tile (compute dtype)
    w_ref : (Kp, TN)   full-K weight slab (VMEM-resident across the grid)
    b_ref : (1, TN)    bias (f32, zero-padded lanes)
    o_ref : (TM, TN)   output tile
    """
    acc = jnp.dot(p_ref[...], w_ref[...], preferred_element_type=jnp.float32)
    o_ref[...] = jnp.maximum(acc + b_ref[...], 0.0).astype(o_ref.dtype)


def _ktiled_gemm_bias_relu_kernel(p_ref, w_ref, b_ref, o_ref, acc_ref):
    """Fallback for very large K: reduction axis last + f32 VMEM accumulator."""
    k = pl.program_id(2)

    @pl.when(k == 0)
    def _():
        acc_ref[...] = jnp.zeros_like(acc_ref)

    acc_ref[...] += jnp.dot(p_ref[...], w_ref[...],
                            preferred_element_type=jnp.float32)

    @pl.when(k == pl.num_programs(2) - 1)
    def _():
        o_ref[...] = jnp.maximum(acc_ref[...] + b_ref[...], 0.0).astype(o_ref.dtype)


def basic_conv3d(x_ncdhw, weight_oidhw, bias, *, stride=1, padding=0,
                 compute_dtype=None):
    """Equivalent of BasicConv3d.forward: Conv3d(stride, padding) + ReLU.

    x_ncdhw      : (N, Cin, D, H, W)       -- PyTorch NCDHW input
    weight_oidhw : (Cout, Cin, KD, KH, KW) -- PyTorch Conv3d weight layout
    bias         : (Cout,)
    compute_dtype: optional MXU operand dtype (e.g. jnp.bfloat16) for the
                   patch/weight streams; accumulation/epilogue stay f32.
    returns      : (N, Cout, Dout, Hout, Wout) in NCDHW.
    """
    N, Cin, D, H, W = x_ncdhw.shape
    Cout, Cin_w, KD, KH, KW = weight_oidhw.shape
    assert Cin == Cin_w
    p, s = padding, stride

    # ---- layout glue (plain JAX): NCDHW -> NDHWC, zero-pad spatial dims. ----
    x = jnp.transpose(x_ncdhw, (0, 2, 3, 4, 1))
    xp = jnp.pad(x, ((0, 0), (p, p), (p, p), (p, p), (0, 0)))
    Dp, Hp, Wp = D + 2 * p, H + 2 * p, W + 2 * p
    Dout = (Dp - KD) // s + 1
    Hout = (Hp - KH) // s + 1
    Wout = (Wp - KW) // s + 1
    M = Dout * Hout * Wout
    Mtot = N * M                       # batch folded into the GEMM row axis
    K = KD * KH * KW * Cin

    # ---- im2col in the wrapper: stride + tap gather happen here, so the ----
    # ---- kernel sees one deep contraction (Mtot, K) x (K, Cout).         ----
    taps = []
    for kd in range(KD):
        for kh in range(KH):
            for kw in range(KW):
                win = jax.lax.slice(
                    xp,
                    (0, kd, kh, kw, 0),
                    (N,
                     kd + s * (Dout - 1) + 1,
                     kh + s * (Hout - 1) + 1,
                     kw + s * (Wout - 1) + 1,
                     Cin),
                    (1, s, s, s, 1))              # (N, Dout, Hout, Wout, Cin)
                taps.append(win)
    patches = jnp.stack(taps, axis=4).reshape(Mtot, K)

    # (Cout, Cin, KD, KH, KW) -> (KD, KH, KW, Cin, Cout) -> (K, Cout); matches
    # the (kd, kh, kw, cin) ordering of the patch columns.
    w = jnp.transpose(weight_oidhw, (2, 3, 4, 1, 0)).reshape(K, Cout)

    cdt = jnp.dtype(compute_dtype) if compute_dtype is not None else patches.dtype
    odt = jnp.dtype(x_ncdhw.dtype)
    cbytes, obytes = cdt.itemsize, odt.itemsize
    sub = max(8, 32 // cbytes)                    # native sublane multiple

    # ---- MXU/lane-friendly padding and tile sizes. ----
    Kp = _round_up(K, 128)
    Coutp = _round_up(Cout, 128)
    if Coutp <= 512:
        TN = Coutp                                # single Cout tile: weight slab
    elif Coutp % 256 == 0:                        # DMA'd once, patches read once
        TN = 256
    else:
        TN = 128

    fuse_k = Kp <= 4096                           # typical BasicConv3d: always

    TILE_BUDGET = 36 * 1024 * 1024                # fits v7x's 64 MiB VMEM
    if fuse_k:
        TK = Kp
        w_resident = 2 * Kp * TN * cbytes
        row_bytes = 2 * Kp * cbytes + 2 * TN * obytes
    else:
        TK = 512 if Kp % 512 == 0 else (256 if Kp % 256 == 0 else 128)
        w_resident = 2 * TK * TN * cbytes
        row_bytes = 2 * TK * cbytes + 2 * TN * obytes + TN * 4    # + f32 acc

    avail = max(TILE_BUDGET - w_resident, row_bytes * sub)
    TM = min(1024, (avail // row_bytes) // sub * sub)
    TM = max(TM, sub)
    # keep >= 2 M-tiles when possible so v7x megacore can split the grid
    TM = min(TM, max(sub, _round_up(-(-Mtot // 2), sub)))
    TM = min(TM, _round_up(Mtot, sub))
    Mp = _round_up(Mtot, TM)

    patches = jnp.pad(patches, ((0, Mp - Mtot), (0, Kp - K))).astype(cdt)
    wp = jnp.pad(w, ((0, Kp - K), (0, Coutp - Cout))).astype(cdt)
    bp = jnp.pad(bias.astype(jnp.float32), (0, Coutp - Cout)).reshape(1, Coutp)

    cost = pl.CostEstimate(
        flops=2 * Mp * Kp * Coutp,
        transcendentals=0,
        bytes_accessed=(Mp * Kp * cbytes + Kp * Coutp * cbytes
                        + Coutp * 4 + Mp * Coutp * obytes))

    cparams = pltpu.CompilerParams(
        dimension_semantics=(("parallel", "parallel") if fuse_k
                             else ("parallel", "parallel", "arbitrary")),
        vmem_limit_bytes=48 * 1024 * 1024)

    if fuse_k:
        out = pl.pallas_call(
            _fused_gemm_bias_relu_kernel,
            out_shape=jax.ShapeDtypeStruct((Mp, Coutp), odt),
            grid_spec=pltpu.PrefetchScalarGridSpec(
                num_scalar_prefetch=0,
                grid=(Mp // TM, Coutp // TN),     # Cout axis inner: patch tile
                in_specs=[                        # is fetched once per M-tile
                    pl.BlockSpec((TM, Kp), lambda i, j: (i, 0)),
                    pl.BlockSpec((Kp, TN), lambda i, j: (0, j)),
                    pl.BlockSpec((1, TN), lambda i, j: (0, j)),
                ],
                out_specs=pl.BlockSpec((TM, TN), lambda i, j: (i, j)),
            ),
            compiler_params=cparams,
            cost_estimate=cost,
        )(patches, wp, bp)
    else:
        out = pl.pallas_call(
            _ktiled_gemm_bias_relu_kernel,
            out_shape=jax.ShapeDtypeStruct((Mp, Coutp), odt),
            grid_spec=pltpu.PrefetchScalarGridSpec(
                num_scalar_prefetch=0,
                grid=(Mp // TM, Coutp // TN, Kp // TK),   # reduction axis last
                in_specs=[
                    pl.BlockSpec((TM, TK), lambda i, j, k: (i, k)),
                    pl.BlockSpec((TK, TN), lambda i, j, k: (k, j)),
                    pl.BlockSpec((1, TN), lambda i, j, k: (0, j)),
                ],
                out_specs=pl.BlockSpec((TM, TN), lambda i, j, k: (i, j)),
                scratch_shapes=[pltpu.VMEM((TM, TN), jnp.float32)],
            ),
            compiler_params=cparams,
            cost_estimate=cost,
        )(patches, wp, bp)

    if Mp != Mtot or Coutp != Cout:
        out = out[:Mtot, :Cout]
    out = out.reshape(N, Dout, Hout, Wout, Cout)
    return jnp.transpose(out, (0, 4, 1, 2, 3))    # back to NCDHW


if __name__ == "__main__":
    # Small shapes: batch=2, in_planes=4, out_planes=8, D=H=W=8, kernel=3, pad=1.
    key = jax.random.PRNGKey(0)
    k_x, k_w, k_b = jax.random.split(key, 3)

    N, Cin, Cout = 2, 4, 8
    D = H = W = 8
    Ksz, stride, padding = 3, 1, 1

    x = jax.random.normal(k_x, (N, Cin, D, H, W), dtype=jnp.float32)

    # Deterministic Conv3d-style init (kaiming-uniform-ish bounds).
    fan_in = Cin * Ksz * Ksz * Ksz
    bound = 1.0 / math.sqrt(fan_in)
    weight = jax.random.uniform(k_w, (Cout, Cin, Ksz, Ksz, Ksz),
                                minval=-bound, maxval=bound, dtype=jnp.float32)
    bias = jax.random.uniform(k_b, (Cout,), minval=-bound, maxval=bound,
                              dtype=jnp.float32)

    out = jax.block_until_ready(
        basic_conv3d(x, weight, bias, stride=stride, padding=padding))

    # Reference check against XLA's conv (same semantics as nn.Conv3d + ReLU).
    ref = jax.lax.conv_general_dilated(
        x, weight, window_strides=(stride,) * 3,
        padding=[(padding, padding)] * 3,
        dimension_numbers=("NCDHW", "OIDHW", "NCDHW"))
    ref = jnp.maximum(ref + bias.reshape(1, -1, 1, 1, 1), 0.0)

    assert out.shape == ref.shape, (out.shape, ref.shape)
    assert jnp.allclose(out, ref, atol=1e-4, rtol=1e-4), \
        float(jnp.max(jnp.abs(out - ref)))

    print("KERNEL_OK")
</pallas_src>

<mosaic_0001>
module attributes {stable_mosaic.version = 11 : i64} {
  func.func @_fused_gemm_bias_relu_kernel(%arg0: i32, %arg1: i32, %arg2: memref<512x128xf32, #tpu.memory_space<vmem>>, %arg3: memref<128x128xf32, #tpu.memory_space<vmem>>, %arg4: memref<1x128xf32, #tpu.memory_space<vmem>>, %arg5: memref<512x128xf32, #tpu.memory_space<vmem>>) attributes {dimension_semantics = [#tpu.dimension_semantics<parallel>, #tpu.dimension_semantics<parallel>], iteration_bounds = array<i64: 2, 1>, scalar_prefetch = 0 : i64, scratch_operands = 0 : i64, tpu.core_type = #tpu.core_type<tc>, window_params = [{transform_indices = @transform_0, window_bounds = array<i64: 512, 128>}, {transform_indices = @transform_1, window_bounds = array<i64: 128, 128>}, {transform_indices = @transform_2, window_bounds = array<i64: 1, 128>}, {transform_indices = @transform_3, window_bounds = array<i64: 512, 128>}]} {
    %c0 = arith.constant 0 : index
    %c0_0 = arith.constant 0 : index
    %0 = vector.load %arg2[%c0, %c0_0] : memref<512x128xf32, #tpu.memory_space<vmem>>, vector<512x128xf32>
    %c0_1 = arith.constant 0 : index
    %c0_2 = arith.constant 0 : index
    %1 = vector.load %arg3[%c0_1, %c0_2] : memref<128x128xf32, #tpu.memory_space<vmem>>, vector<128x128xf32>
    %cst = arith.constant dense<0.000000e+00> : vector<512x128xf32>
    %2 = tpu.matmul %0, %1, %cst {dimension_numbers = #tpu.dot_dimension_numbers<[1], [0], [0], [1], [0, 0, 1, 1], [], []>} : vector<512x128xf32>, vector<128x128xf32>, vector<512x128xf32> -> vector<512x128xf32>
    %c0_3 = arith.constant 0 : index
    %c0_4 = arith.constant 0 : index
    %3 = vector.load %arg4[%c0_3, %c0_4] : memref<1x128xf32, #tpu.memory_space<vmem>>, vector<1x128xf32>
    %4 = vector.broadcast %3 : vector<1x128xf32> to vector<512x128xf32>
    %5 = arith.addf %2, %4 : vector<512x128xf32>
    %cst_5 = arith.constant 0.000000e+00 : f32
    %6 = vector.broadcast %cst_5 : f32 to vector<512x128xf32>
    %7 = arith.maximumf %5, %6 : vector<512x128xf32>
    %c0_6 = arith.constant 0 : index
    %c0_7 = arith.constant 0 : index
    %8 = vector.load %arg5[%c0_6, %c0_7] : memref<512x128xf32, #tpu.memory_space<vmem>>, vector<512x128xf32>
    tpu.vector_store %arg5[%c0_6, %c0_7], %7 {strides = array<i32>} : memref<512x128xf32, #tpu.memory_space<vmem>>, vector<512x128xf32>,
    return
  }
  func.func @transform_0(%arg0: i32, %arg1: i32) -> (i32, i32) {
    %c0_i32 = arith.constant 0 : i32
    %c0_i32_0 = arith.constant 0 : i32
    return %arg0, %c0_i32 : i32, i32
  }
  func.func @transform_1(%arg0: i32, %arg1: i32) -> (i32, i32) {
    %c0_i32 = arith.constant 0 : i32
    %c0_i32_0 = arith.constant 0 : i32
    return %c0_i32, %arg1 : i32, i32
  }
  func.func @transform_2(%arg0: i32, %arg1: i32) -> (i32, i32) {
    %c0_i32 = arith.constant 0 : i32
    %c0_i32_0 = arith.constant 0 : i32
    return %c0_i32, %arg1 : i32, i32
  }
  func.func @transform_3(%arg0: i32, %arg1: i32) -> (i32, i32) {
    %c0_i32 = arith.constant 0 : i32
    return %arg0, %arg1 : i32, i32
  }
}

</mosaic_0001>

<bundles_post_ra>
// kernel: tpu_custom_call.1
= control target key start
LH: loop header
LB: loop body
LE: loop exit
PB: predicated region body
PF: predicated region fallthrough
CT: control target
= control target key end

     0   :  { %s1470_s0 = inlined_call_operand.hbm [shape: f32[1024,128], index: 0, kind: input, shape index: {}]   ;;  %s1471_s1 = inlined_call_operand.hbm [shape: f32[128,128], index: 1, kind: input, shape index: {}]   ;;  %s1472_s2 = inlined_call_operand.vmem [shape: f32[1,128], index: 2, kind: input, shape index: {}]   ;;  %s1473_s3 = inlined_call_operand.hbm [shape: f32[1024,128], index: 3, kind: output, shape index: {}]  }
   0x1   :  { %1475 = sst [smem:[#allocation11_spill]] %s1471_s1 }
   0x2   :  { %8 = vsyncpa [#allocation3], 0 }
   0x3   :  { %10 = vsyncpa [#allocation3 + $0x1], 0 }
   0x4   :  { %11 = vsyncpa [#allocation6], 0 }
   0x5   :  { %12 = vsyncpa [#allocation4], 0 }
   0x6   :  { %14 = vsyncpa [#allocation4 + $0x1], 0  ;;  %s1109_s12 = smov 0   ;;  %s1111_s13 = smov 0  }
   0x7   :  { %s1113_s14 = smov 0   ;;  %s1115_s15 = smov 0  }
   0x8   :  { %s1117_s16 = smov 0   ;;  %s1119_s17 = smov 0  }
   0x9 LB: > { %s790_s18 = sadd.s32 4294967295, %s1082_s17   ;;  %s791_s19 = sadd.s32 4294967294, %s1082_s17   ;;  %s1082_s17 = sphi %s1119_s17, %s20_s17   ;;  %s1078_s16 = sphi %s1117_s16, %s1489_s16   ;;  %s1074_s15 = sphi %s1115_s15, %s1488_s15   ;;  %s1070_s14 = sphi %s1113_s14, %s1487_s14   ;;  %s1066_s13 = sphi %s1111_s13, %s1486_s13   ;;  %s1062_s12 = sphi %s1109_s12, %s1485_s12  }
   0xa   : > { %p52_p0 = scmp.ne.s32.totalorder %s1066_s13, %s1062_s12  ;;  %p1143_p1 = scmp.eq.s32.totalorder %s790_s18, 0 }
   0xb   : > { %p1147_p2 = scmp.eq.s32.totalorder %s790_s18, 1  ;;  %p136_p3 = scmp.eq.s32.totalorder %s791_s19, 1 }
   0xc   : > { %p1153_p4 = por %p1143_p1, %p52_p0  ;;  %p792_p5 = scmp.ge.s32.totalorder %s1082_s17, 1 }
   0xd   : > { %p1158_p6 = por %p136_p3, %p52_p0  ;;  %p143_p7 = scmp.lt.s32.totalorder %s1082_s17, 3 }
   0xe   : > { %s1480_s1 = sld [smem:[#allocation11_spill]]  ;;  %s1084_s28 = smov [#allocation5]  }
   0xf   : > { %p1166_p8 = pnand %p792_p5, %p143_p7  ;;  %s158_s29 = sshll.u32 %s1084_s28, 4  ;;  %s159_s29 = int_to_ptr.vmem [resolvable:$true] %s158_s29 }
  0x10   : > { %p795_p11 = scmp.ge.s32.totalorder %s1082_s17, 2  ;;  %s1474_s30 = smov 128  }
  0x11   : > { %p866_p9 = pneg %p1166_p8  ;;  %s1086_s4 = smov 8  }
  0x12   : > { %s32_s5 = sadd.s32 1, %s1078_s16  ;;  %s39_s6 = sadd.s32 1, %s1070_s14 }
  0x13   : > { %p867_p10 = pnand %p866_p9, %p1143_p1  ;;  %p34_p12 = scmp.ge.s32.totalorder %s32_s5, 2 }
  0x14   : > { %s156_s26 = sshll.u32 %s1480_s1, 4  ;;  %p46_p13 = scmp.ne.s32.totalorder %s1070_s14, %s1066_s13  ;;  %s157_s26 = int_to_ptr.hbm [resolvable:$true] %s156_s26 }
  0x15   : > { %869 = dma.hbm_to_vmem [thread:$0]  (!%p867_p10), %s157_s26, 2048, %s159_s29, [#allocation6], %s1474_s30, %s1474_s30, %s1086_s4  }
  0x16   : > { %p47_p0 = scmp.eq.s32.totalorder %s1082_s17, 0  ;;  %s1491_s5 = smov (%p34_p12, %s32_s5), 0 }
  0x17   : > { %p1191_p5 = por %p1147_p2, %p46_p13  ;;  %s36_s9 = ssub.s32 %s1078_s16, %s1491_s5 }
  0x18   : > { %p1185_p3 = por %p47_p0, %p46_p13  ;;  %p879_p7 = scmp.lt.s32.totalorder %s1082_s17, 2 }
  0x19   : > { %p37_p9 = scmp.eq.s32.totalorder %s36_s9, 0  ;;  %s178_s10 = sand.u32 1, %s1070_s14  }
  0x1a   : > { %s796_s11 = sshll.u32 %s178_s10, 9  ;;  %s808_s19 = sshll.u32 %s1078_s16, 9 }
  0x1b   : > { %s1200_s18 = scalar_select %p37_p9, %s1070_s14, %s39_s6  }
  0x1c   : > { %s187_s26 = scalar_lea.hbm %s1470_s0, %s808_s19  ;;  %s182_s28 = scalar_lea.vmem [#allocation2], %s796_s11 }
  0x1d   : > { %s190_s29 = sshll.u32 %s182_s28, 4  ;;  %s188_s21 = sshll.u32 %s187_s26, 4  ;;  %s191_s29 = int_to_ptr.vmem [resolvable:$true] %s190_s29  ;;  %s189_s21 = int_to_ptr.hbm [resolvable:$true] %s188_s21 }
  0x1e   : > { %p871_p2 = pnand %p879_p7, %p1185_p3  ;;  %s179_s30 = scalar_lea.sflag [#allocation3], %s178_s10 }
  0x1f   : > { %s1484_s1 = smov 128   ;;  %202 = sbr.rel (%p1166_p8) target bundleno = 332 (0x14c), region = 32 }
  0x20   : > { %873 = dma.hbm_to_vmem [thread:$0]  (!%p871_p2), %s189_s21, 8192, %s191_s29, %s179_s30, %s1484_s1, %s1484_s1, %s1086_s4  }
  0x21   : > { %s1214_s6 = sand.u32 (!%p1166_p8), 1, %s1066_s13  }
  0x22   : > { %s800_s9 = sshll.u32 (!%p1166_p8), %s1214_s6, 9  ;;  %s205_s11 = scalar_lea.sflag (!%p1166_p8), [#allocation3], %s1214_s6 }
  0x23   : > { %s1220_s7 = scalar_lea.vmem (!%p1166_p8), [#allocation2], %s800_s9 }
  0x24   : > { %1049 = dma.done.wait (%p1153_p4), %s205_s11, 8192  }
  0x25   : > { %1051 = vsyncadd (%p1153_p4), %s205_s11, 4294959104 }
  0x26   : > { %1053 = dma.done.wait (%p1143_p1), [#allocation6], 2048  }
  0x27   : > { %1055 = vsyncadd (%p1143_p1), [#allocation6], 4294965248  ;;  %v324_v0 = vld [vmem:[#allocation5 + $0x78] sm:$0xff]  ;;  %v323_v1 = vld [vmem:[#allocation5 + $0x70] sm:$0xff]  ;;  %s1303_s22 = scalar_lea.vmem [#allocation7], %s800_s9  ;;  %s809_s27 = sshll.u32 %s1074_s15, 9 }
  0x28   : > { %811 = vmatpush.msra.mxu2 %v324_v0  ;;  %812 = vmatpush.msra.mxu3 %v324_v0  ;;  %v322_v2 = vld [vmem:[#allocation5 + $0x68] sm:$0xff]  ;;  %v321_v3 = vld [vmem:[#allocation5 + $0x60] sm:$0xff]  ;;  %v320_v4 = vld [vmem:[#allocation5 + $0x58] sm:$0xff]  ;;  %s679_s10 = scalar_lea.hbm %s1473_s3, %s809_s27  ;;  %s680_s15 = sshll.u32 %s1303_s22, 4  ;;  %s681_s15 = int_to_ptr.vmem [resolvable:$true] %s680_s15 }
  0x29   : > { %329 = vmatpush.msra.mxu0 %v324_v0  ;;  %810 = vmatpush.msra.mxu1 %v324_v0  ;;  %v319_v5 = vld [vmem:[#allocation5 + $0x50] sm:$0xff]  ;;  %v318_v6 = vld [vmem:[#allocation5 + $0x48] sm:$0xff]  ;;  %v317_v7 = vld [vmem:[#allocation5 + $0x40] sm:$0xff]  ;;  %s682_s19 = sshll.u32 %s679_s10, 4  ;;  %s667_s24 = scalar_lea.sflag [#allocation4], %s1214_s6  ;;  %s683_s19 = int_to_ptr.hbm [resolvable:$true] %s682_s19 }
  0x2a   : > { %814 = vmatpush.msra.mxu2 %v323_v1  ;;  %815 = vmatpush.msra.mxu3 %v323_v1  ;;  %v316_v8 = vld [vmem:[#allocation5 + $0x38] sm:$0xff]  ;;  %v315_v9 = vld [vmem:[#allocation5 + $0x30] sm:$0xff]  ;;  %v314_v10 = vld [vmem:[#allocation5 + $0x28] sm:$0xff]  ;;  %s1010_s25 = sshra.s32 %s683_s19, 4  ;;  %s1016_s21 = scalar_lea.hbm %s1473_s3, 1024  ;;  %s1011_s25 = int_to_ptr.hbm [resolvable:$true] %s1010_s25 }
  0x2b   : > { %330 = vmatpush.msra.mxu0 %v323_v1  ;;  %813 = vmatpush.msra.mxu1 %v323_v1  ;;  %v313_v11 = vld [vmem:[#allocation5 + $0x20] sm:$0xff]  ;;  %v312_v12 = vld [vmem:[#allocation5 + $0x18] sm:$0xff]  ;;  %v311_v13 = vld [vmem:[#allocation5 + $0x10] sm:$0xff]  ;;  %s1012_s26 = scalar_lea.hbm %s1011_s25, 512  ;;  %p1017_p10 = scmp.lt.s32.totalorder %s1011_s25, %s1473_s3 }
  0x2c   : > { %817 = vmatpush.msra.mxu2 %v322_v2  ;;  %818 = vmatpush.msra.mxu3 %v322_v2  ;;  %v310_v14 = vld [vmem:[#allocation5 + $0x8] sm:$0xff]  ;;  %v309_v15 = vld [vmem:[#allocation5] sm:$0xff]  ;;  %v279_v24 = vld [vmem:[%s1220_s7 + $0x110] sm:$0xff]  ;;  %p1013_p1 = scmp.ne.s32.totalorder %s1011_s25, %s1012_s26  ;;  %p1018_p12 = scmp.lt.s32.totalorder %s1016_s21, %s1012_s26 }
  0x2d   : > { %331 = vmatpush.msra.mxu0 %v322_v2  ;;  %816 = vmatpush.msra.mxu1 %v322_v2  ;;  %v277_v16 = vld [vmem:[%s1220_s7 + $0x100] sm:$0xff]  ;;  %v278_v20 = vld [vmem:[%s1220_s7 + $0x108] sm:$0xff]  ;;  %v295_v25 = vld [vmem:[%s1220_s7 + $0x190] sm:$0xff] }
  0x2e   : > { %820 = vmatpush.msra.mxu2 %v321_v3  ;;  %821 = vmatpush.msra.mxu3 %v321_v3  ;;  %v293_v17 = vld [vmem:[%s1220_s7 + $0x180] sm:$0xff]  ;;  %v294_v21 = vld [vmem:[%s1220_s7 + $0x188] sm:$0xff]  ;;  %v247_v26 = vld [vmem:[%s1220_s7 + $0x10] sm:$0xff]  ;;  %p1014_p4 = pnand %p1013_p1, %p1191_p5  ;;  %p1019_p13 = por %p1018_p12, %p1017_p10 }
  0x2f   : > { %332 = vmatpush.msra.mxu0 %v321_v3  ;;  %819 = vmatpush.msra.mxu1 %v321_v3  ;;  %v245_v18 = vld [vmem:[%s1220_s7] sm:$0xff]  ;;  %v246_v22 = vld [vmem:[%s1220_s7 + $0x8] sm:$0xff]  ;;  %v263_v27 = vld [vmem:[%s1220_s7 + $0x90] sm:$0xff] }
  0x30   : > { %823 = vmatpush.msra.mxu2 %v320_v4  ;;  %824 = vmatpush.msra.mxu3 %v320_v4  ;;  %v261_v19 = vld [vmem:[%s1220_s7 + $0x80] sm:$0xff]  ;;  %v262_v23 = vld [vmem:[%s1220_s7 + $0x88] sm:$0xff]  ;;  %v280_v28 = vld [vmem:[%s1220_s7 + $0x118] sm:$0xff]  ;;  %p1015_p8 = pneg %p1014_p4 }
  0x31   : > { %333 = vmatpush.msra.mxu0 %v320_v4  ;;  %822 = vmatpush.msra.mxu1 %v320_v4  ;;  %v296_v29 = vld [vmem:[%s1220_s7 + $0x198] sm:$0xff]  ;;  %v281_v32 = vld [vmem:[%s1220_s7 + $0x120] sm:$0xff]  ;;  %v282_v36 = vld [vmem:[%s1220_s7 + $0x128] sm:$0xff] }
  0x32   : > { %826 = vmatpush.msra.mxu2 %v319_v5  ;;  %827 = vmatpush.msra.mxu3 %v319_v5  ;;  %v248_v30 = vld [vmem:[%s1220_s7 + $0x18] sm:$0xff]  ;;  %v297_v33 = vld [vmem:[%s1220_s7 + $0x1a0] sm:$0xff]  ;;  %v298_v37 = vld [vmem:[%s1220_s7 + $0x1a8] sm:$0xff]  ;;  %p1020_p0 = pnand %p1019_p13, %p1015_p8 }
  0x33   : > { %334 = vmatpush.msra.mxu0 %v319_v5  ;;  %825 = vmatpush.msra.mxu1 %v319_v5  ;;  %v264_v31 = vld [vmem:[%s1220_s7 + $0x98] sm:$0xff]  ;;  %v249_v34 = vld [vmem:[%s1220_s7 + $0x20] sm:$0xff]  ;;  %v250_v38 = vld [vmem:[%s1220_s7 + $0x28] sm:$0xff] }
  0x34   : > { %829 = vmatpush.msra.mxu2 %v318_v6  ;;  %830 = vmatpush.msra.mxu3 %v318_v6  ;;  %v265_v35 = vld [vmem:[%s1220_s7 + $0xa0] sm:$0xff]  ;;  %v266_v39 = vld [vmem:[%s1220_s7 + $0xa8] sm:$0xff]  ;;  %v283_v40 = vld [vmem:[%s1220_s7 + $0x130] sm:$0xff] }
  0x35   : > { %335 = vmatpush.msra.mxu0 %v318_v6  ;;  %828 = vmatpush.msra.mxu1 %v318_v6  ;;  %v299_v41 = vld [vmem:[%s1220_s7 + $0x1b0] sm:$0xff]  ;;  %v284_v44 = vld [vmem:[%s1220_s7 + $0x138] sm:$0xff]  ;;  %v285_v48 = vld [vmem:[%s1220_s7 + $0x140] sm:$0xff] }
  0x36   : > { %832 = vmatpush.msra.mxu2 %v317_v7  ;;  %833 = vmatpush.msra.mxu3 %v317_v7  ;;  %v251_v42 = vld [vmem:[%s1220_s7 + $0x30] sm:$0xff]  ;;  %v300_v45 = vld [vmem:[%s1220_s7 + $0x1b8] sm:$0xff]  ;;  %v301_v49 = vld [vmem:[%s1220_s7 + $0x1c0] sm:$0xff] }
  0x37   : > { %336 = vmatpush.msra.mxu0 %v317_v7  ;;  %831 = vmatpush.msra.mxu1 %v317_v7  ;;  %v267_v43 = vld [vmem:[%s1220_s7 + $0xb0] sm:$0xff]  ;;  %v252_v46 = vld [vmem:[%s1220_s7 + $0x38] sm:$0xff]  ;;  %v253_v50 = vld [vmem:[%s1220_s7 + $0x40] sm:$0xff] }
  0x38   : > { %835 = vmatpush.msra.mxu2 %v316_v8  ;;  %836 = vmatpush.msra.mxu3 %v316_v8  ;;  %v268_v47 = vld [vmem:[%s1220_s7 + $0xb8] sm:$0xff]  ;;  %v269_v51 = vld [vmem:[%s1220_s7 + $0xc0] sm:$0xff]  ;;  %v286_v52 = vld [vmem:[%s1220_s7 + $0x148] sm:$0xff] }
  0x39   : > { %337 = vmatpush.msra.mxu0 %v316_v8  ;;  %834 = vmatpush.msra.mxu1 %v316_v8  ;;  %v302_v53 = vld [vmem:[%s1220_s7 + $0x1c8] sm:$0xff]  ;;  %v287_v56 = vld [vmem:[%s1220_s7 + $0x150] sm:$0xff]  ;;  %v288_v60 = vld [vmem:[%s1220_s7 + $0x158] sm:$0xff] }
  0x3a   : > { %838 = vmatpush.msra.mxu2 %v315_v9  ;;  %839 = vmatpush.msra.mxu3 %v315_v9  ;;  %v254_v54 = vld [vmem:[%s1220_s7 + $0x48] sm:$0xff]  ;;  %v303_v57 = vld [vmem:[%s1220_s7 + $0x1d0] sm:$0xff]  ;;  %v304_v61 = vld [vmem:[%s1220_s7 + $0x1d8] sm:$0xff] }
  0x3b   : > { %338 = vmatpush.msra.mxu0 %v315_v9  ;;  %837 = vmatpush.msra.mxu1 %v315_v9  ;;  %v270_v55 = vld [vmem:[%s1220_s7 + $0xc8] sm:$0xff]  ;;  %v255_v58 = vld [vmem:[%s1220_s7 + $0x50] sm:$0xff]  ;;  %v256_v62 = vld [vmem:[%s1220_s7 + $0x58] sm:$0xff] }
  0x3c   : > { %841 = vmatpush.msra.mxu2 %v314_v10  ;;  %842 = vmatpush.msra.mxu3 %v314_v10  ;;  %v271_v59 = vld [vmem:[%s1220_s7 + $0xd0] sm:$0xff]  ;;  %v272_v63 = vld [vmem:[%s1220_s7 + $0xd8] sm:$0xff]  ;;  %v289_v0 = vld [vmem:[%s1220_s7 + $0x160] sm:$0xff] }
  0x3d   : > { %339 = vmatpush.msra.mxu0 %v314_v10  ;;  %840 = vmatpush.msra.mxu1 %v314_v10  ;;  %v305_v1 = vld [vmem:[%s1220_s7 + $0x1e0] sm:$0xff]  ;;  %v290_v4 = vld [vmem:[%s1220_s7 + $0x168] sm:$0xff]  ;;  %v291_v8 = vld [vmem:[%s1220_s7 + $0x170] sm:$0xff] }
  0x3e   : > { %844 = vmatpush.msra.mxu2 %v313_v11  ;;  %845 = vmatpush.msra.mxu3 %v313_v11  ;;  %v257_v2 = vld [vmem:[%s1220_s7 + $0x60] sm:$0xff]  ;;  %v306_v5 = vld [vmem:[%s1220_s7 + $0x1e8] sm:$0xff]  ;;  %v307_v9 = vld [vmem:[%s1220_s7 + $0x1f0] sm:$0xff] }
  0x3f   : > { %340 = vmatpush.msra.mxu0 %v313_v11  ;;  %843 = vmatpush.msra.mxu1 %v313_v11  ;;  %v273_v3 = vld [vmem:[%s1220_s7 + $0xe0] sm:$0xff]  ;;  %v258_v6 = vld [vmem:[%s1220_s7 + $0x68] sm:$0xff]  ;;  %v259_v10 = vld [vmem:[%s1220_s7 + $0x70] sm:$0xff] }
  0x40   : > { %847 = vmatpush.msra.mxu2 %v312_v12  ;;  %848 = vmatpush.msra.mxu3 %v312_v12  ;;  %v274_v7 = vld [vmem:[%s1220_s7 + $0xe8] sm:$0xff]  ;;  %v275_v11 = vld [vmem:[%s1220_s7 + $0xf0] sm:$0xff] }
  0x41   : > { %341 = vmatpush.msra.mxu0 %v312_v12  ;;  %846 = vmatpush.msra.mxu1 %v312_v12  ;;  %v292_v12 = vld [vmem:[%s1220_s7 + $0x178] sm:$0xff] }
  0x42   : > { %850 = vmatpush.msra.mxu2 %v311_v13  ;;  %851 = vmatpush.msra.mxu3 %v311_v13 }
  0x43   : > { %342 = vmatpush.msra.mxu0 %v311_v13  ;;  %849 = vmatpush.msra.mxu1 %v311_v13  ;;  %v308_v13 = vld [vmem:[%s1220_s7 + $0x1f8] sm:$0xff] }
  0x44   : > { %853 = vmatpush.msra.mxu2 %v310_v14  ;;  %854 = vmatpush.msra.mxu3 %v310_v14 }
  0x45   : > { %343 = vmatpush.msra.mxu0 %v310_v14  ;;  %852 = vmatpush.msra.mxu1 %v310_v14  ;;  %v260_v14 = vld [vmem:[%s1220_s7 + $0x78] sm:$0xff] }
  0x46   : > { %856 = vmatpush.msra.mxu2 %v309_v15  ;;  %857 = vmatpush.msra.mxu3 %v309_v15 }
  0x47   : > { %441 = vmatmul.f32.vlgmr.msra.gmra.mxu2 %v277_v16  ;;  %489 = vmatmul.f32.vlgmr.msra.gmra.mxu3 %v293_v17  ;;  %v1297_v16 = vld [vmem:[%s1472_s2] ss:$0 sm:$0xff] }
  0x48   : > { %344 = vmatpush.msra.mxu0 %v309_v15  ;;  %855 = vmatpush.msra.mxu1 %v309_v15  ;;  %v276_v15 = vld [vmem:[%s1220_s7 + $0xf8] sm:$0xff] }
  0x49   : > { %345 = vmatmul.f32.vlgmr.msra.gmra.mxu0 %v245_v18  ;;  %393 = vmatmul.f32.vlgmr.msra.gmra.mxu1 %v261_v19 }
  0x4f   : > { %444 = vmatmul.f32.gmra.mxu2 %v278_v20  ;;  %492 = vmatmul.f32.gmra.mxu3 %v294_v21 }
  0x51   : > { %348 = vmatmul.f32.gmra.mxu0 %v246_v22  ;;  %396 = vmatmul.f32.gmra.mxu1 %v262_v23 }
  0x57   : > { %447 = vmatmul.f32.gmra.mxu2 %v279_v24  ;;  %495 = vmatmul.f32.gmra.mxu3 %v295_v25 }
  0x59   : > { %351 = vmatmul.f32.gmra.mxu0 %v247_v26  ;;  %399 = vmatmul.f32.gmra.mxu1 %v263_v27 }
  0x5f   : > { %450 = vmatmul.f32.gmra.mxu2 %v280_v28  ;;  %498 = vmatmul.f32.gmra.mxu3 %v296_v29 }
  0x61   : > { %354 = vmatmul.f32.gmra.mxu0 %v248_v30  ;;  %402 = vmatmul.f32.gmra.mxu1 %v264_v31 }
  0x67   : > { %453 = vmatmul.f32.gmra.mxu2 %v281_v32  ;;  %501 = vmatmul.f32.gmra.mxu3 %v297_v33 }
  0x69   : > { %357 = vmatmul.f32.gmra.mxu0 %v249_v34  ;;  %405 = vmatmul.f32.gmra.mxu1 %v265_v35 }
  0x6f   : > { %456 = vmatmul.f32.gmra.mxu2 %v282_v36  ;;  %504 = vmatmul.f32.gmra.mxu3 %v298_v37 }
  0x71   : > { %360 = vmatmul.f32.gmra.mxu0 %v250_v38  ;;  %408 = vmatmul.f32.gmra.mxu1 %v266_v39 }
  0x77   : > { %459 = vmatmul.f32.gmra.mxu2 %v283_v40  ;;  %507 = vmatmul.f32.gmra.mxu3 %v299_v41 }
  0x79   : > { %363 = vmatmul.f32.gmra.mxu0 %v251_v42  ;;  %411 = vmatmul.f32.gmra.mxu1 %v267_v43 }
  0x7f   : > { %462 = vmatmul.f32.gmra.mxu2 %v284_v44  ;;  %510 = vmatmul.f32.gmra.mxu3 %v300_v45 }
  0x81   : > { %366 = vmatmul.f32.gmra.mxu0 %v252_v46  ;;  %414 = vmatmul.f32.gmra.mxu1 %v268_v47 }
  0x87   : > { %465 = vmatmul.f32.gmra.mxu2 %v285_v48  ;;  %513 = vmatmul.f32.gmra.mxu3 %v301_v49 }
  0x89   : > { %369 = vmatmul.f32.gmra.mxu0 %v253_v50  ;;  %417 = vmatmul.f32.gmra.mxu1 %v269_v51 }
  0x8f   : > { %468 = vmatmul.f32.gmra.mxu2 %v286_v52  ;;  %516 = vmatmul.f32.gmra.mxu3 %v302_v53 }
  0x91   : > { %372 = vmatmul.f32.gmra.mxu0 %v254_v54  ;;  %420 = vmatmul.f32.gmra.mxu1 %v270_v55 }
  0x97   : > { %471 = vmatmul.f32.gmra.mxu2 %v287_v56  ;;  %519 = vmatmul.f32.gmra.mxu3 %v303_v57 }
  0x99   : > { %375 = vmatmul.f32.gmra.mxu0 %v255_v58  ;;  %423 = vmatmul.f32.gmra.mxu1 %v271_v59 }
  0x9f   : > { %474 = vmatmul.f32.gmra.mxu2 %v288_v60  ;;  %522 = vmatmul.f32.gmra.mxu3 %v304_v61 }
  0xa1   : > { %378 = vmatmul.f32.gmra.mxu0 %v256_v62  ;;  %426 = vmatmul.f32.gmra.mxu1 %v272_v63 }
  0xa7   : > { %477 = vmatmul.f32.gmra.mxu2 %v289_v0  ;;  %525 = vmatmul.f32.gmra.mxu3 %v305_v1 }
  0xa9   : > { %381 = vmatmul.f32.gmra.mxu0 %v257_v2  ;;  %429 = vmatmul.f32.gmra.mxu1 %v273_v3 }
  0xaf   : > { %480 = vmatmul.f32.gmra.mxu2 %v290_v4  ;;  %528 = vmatmul.f32.gmra.mxu3 %v306_v5 }
  0xb1   : > { %384 = vmatmul.f32.gmra.mxu0 %v258_v6  ;;  %432 = vmatmul.f32.gmra.mxu1 %v274_v7 }
  0xb7   : > { %483 = vmatmul.f32.gmra.mxu2 %v291_v8  ;;  %531 = vmatmul.f32.gmra.mxu3 %v307_v9 }
  0xb9   : > { %387 = vmatmul.f32.gmra.mxu0 %v259_v10  ;;  %435 = vmatmul.f32.gmra.mxu1 %v275_v11 }
  0xbf   : > { %486 = vmatmul.f32.gmra.mxu2 %v292_v12  ;;  %534 = vmatmul.f32.gmra.mxu3 %v308_v13 }
  0xc1   : > { %390 = vmatmul.f32.gmra.mxu0 %v260_v14  ;;  %438 = vmatmul.f32.gmra.mxu1 %v276_v15 }
  0xc6   : > { %v346_v17 = vpop.f32.mrf.mxu0  ;;  %v394_v18 = vpop.f32.mrf.mxu1 }
  0xc7   : > { %v347_v19 = vadd.f32 %v1297_v16, %v346_v17  ;;  %v395_v20 = vadd.f32 %v1297_v16, %v394_v18 }
  0xc9   : > { %v538_v21 = vmax.f32 %v347_v19, 0.0  ;;  %v554_v22 = vmax.f32 %v395_v20, 0.0 }
  0xca   : > { %v442_v23 = vpop.f32.mrf.mxu2  ;;  %v490_v24 = vpop.f32.mrf.mxu3 }
  0xcb   : > { %602 = vst [vmem:[%s1303_s22] sm:$0xff] %v538_v21  ;;  %v443_v25 = vadd.f32 %v1297_v16, %v442_v23  ;;  %v491_v26 = vadd.f32 %v1297_v16, %v490_v24 }
  0xcc   : > { %618 = vst [vmem:[%s1303_s22 + $0x80] sm:$0xff] %v554_v22 }
  0xcd   : > { %v570_v27 = vmax.f32 %v443_v25, 0.0  ;;  %v586_v28 = vmax.f32 %v491_v26, 0.0 }
  0xce   : > { %v349_v29 = vpop.f32.mrf.mxu0  ;;  %v397_v30 = vpop.f32.mrf.mxu1 }
  0xcf   : > { %634 = vst [vmem:[%s1303_s22 + $0x100] sm:$0xff] %v570_v27  ;;  %v350_v31 = vadd.f32 %v1297_v16, %v349_v29  ;;  %v398_v32 = vadd.f32 %v1297_v16, %v397_v30 }
  0xd0   : > { %650 = vst [vmem:[%s1303_s22 + $0x180] sm:$0xff] %v586_v28 }
  0xd1   : > { %v539_v33 = vmax.f32 %v350_v31, 0.0  ;;  %v555_v34 = vmax.f32 %v398_v32, 0.0 }
  0xd2   : > { %v445_v35 = vpop.f32.mrf.mxu2  ;;  %v493_v36 = vpop.f32.mrf.mxu3 }
  0xd3   : > { %603 = vst [vmem:[%s1303_s22 + $0x8] sm:$0xff] %v539_v33  ;;  %v446_v37 = vadd.f32 %v1297_v16, %v445_v35  ;;  %v494_v38 = vadd.f32 %v1297_v16, %v493_v36 }
  0xd4   : > { %619 = vst [vmem:[%s1303_s22 + $0x88] sm:$0xff] %v555_v34 }
  0xd5   : > { %v571_v39 = vmax.f32 %v446_v37, 0.0  ;;  %v587_v40 = vmax.f32 %v494_v38, 0.0 }
  0xd6   : > { %v352_v41 = vpop.f32.mrf.mxu0  ;;  %v400_v42 = vpop.f32.mrf.mxu1 }
  0xd7   : > { %635 = vst [vmem:[%s1303_s22 + $0x108] sm:$0xff] %v571_v39  ;;  %v353_v43 = vadd.f32 %v1297_v16, %v352_v41  ;;  %v401_v44 = vadd.f32 %v1297_v16, %v400_v42 }
  0xd8   : > { %651 = vst [vmem:[%s1303_s22 + $0x188] sm:$0xff] %v587_v40 }
  0xd9   : > { %v540_v45 = vmax.f32 %v353_v43, 0.0  ;;  %v556_v46 = vmax.f32 %v401_v44, 0.0 }
  0xda   : > { %v448_v47 = vpop.f32.mrf.mxu2  ;;  %v496_v48 = vpop.f32.mrf.mxu3 }
  0xdb   : > { %604 = vst [vmem:[%s1303_s22 + $0x10] sm:$0xff] %v540_v45  ;;  %v449_v49 = vadd.f32 %v1297_v16, %v448_v47  ;;  %v497_v50 = vadd.f32 %v1297_v16, %v496_v48 }
  0xdc   : > { %620 = vst [vmem:[%s1303_s22 + $0x90] sm:$0xff] %v556_v46 }
  0xdd   : > { %v572_v51 = vmax.f32 %v449_v49, 0.0  ;;  %v588_v52 = vmax.f32 %v497_v50, 0.0 }
  0xde   : > { %v355_v53 = vpop.f32.mrf.mxu0  ;;  %v403_v54 = vpop.f32.mrf.mxu1 }
  0xdf   : > { %636 = vst [vmem:[%s1303_s22 + $0x110] sm:$0xff] %v572_v51  ;;  %v356_v55 = vadd.f32 %v1297_v16, %v355_v53  ;;  %v404_v56 = vadd.f32 %v1297_v16, %v403_v54 }
  0xe0   : > { %652 = vst [vmem:[%s1303_s22 + $0x190] sm:$0xff] %v588_v52 }
  0xe1   : > { %v541_v57 = vmax.f32 %v356_v55, 0.0  ;;  %v557_v58 = vmax.f32 %v404_v56, 0.0 }
  0xe2   : > { %v451_v59 = vpop.f32.mrf.mxu2  ;;  %v499_v60 = vpop.f32.mrf.mxu3 }
  0xe3   : > { %605 = vst [vmem:[%s1303_s22 + $0x18] sm:$0xff] %v541_v57  ;;  %v452_v61 = vadd.f32 %v1297_v16, %v451_v59  ;;  %v500_v62 = vadd.f32 %v1297_v16, %v499_v60 }
  0xe4   : > { %621 = vst [vmem:[%s1303_s22 + $0x98] sm:$0xff] %v557_v58 }
  0xe5   : > { %v573_v63 = vmax.f32 %v452_v61, 0.0  ;;  %v589_v0 = vmax.f32 %v500_v62, 0.0 }
  0xe6   : > { %v358_v1 = vpop.f32.mrf.mxu0  ;;  %v406_v2 = vpop.f32.mrf.mxu1 }
  0xe7   : > { %637 = vst [vmem:[%s1303_s22 + $0x118] sm:$0xff] %v573_v63  ;;  %v359_v3 = vadd.f32 %v1297_v16, %v358_v1  ;;  %v407_v4 = vadd.f32 %v1297_v16, %v406_v2 }
  0xe8   : > { %653 = vst [vmem:[%s1303_s22 + $0x198] sm:$0xff] %v589_v0 }
  0xe9   : > { %v542_v5 = vmax.f32 %v359_v3, 0.0  ;;  %v558_v6 = vmax.f32 %v407_v4, 0.0 }
  0xea   : > { %v454_v7 = vpop.f32.mrf.mxu2  ;;  %v502_v8 = vpop.f32.mrf.mxu3 }
  0xeb   : > { %606 = vst [vmem:[%s1303_s22 + $0x20] sm:$0xff] %v542_v5  ;;  %v455_v9 = vadd.f32 %v1297_v16, %v454_v7  ;;  %v503_v10 = vadd.f32 %v1297_v16, %v502_v8 }
  0xec   : > { %622 = vst [vmem:[%s1303_s22 + $0xa0] sm:$0xff] %v558_v6 }
  0xed   : > { %v574_v11 = vmax.f32 %v455_v9, 0.0  ;;  %v590_v12 = vmax.f32 %v503_v10, 0.0 }
  0xee   : > { %v361_v13 = vpop.f32.mrf.mxu0  ;;  %v409_v14 = vpop.f32.mrf.mxu1 }
  0xef   : > { %638 = vst [vmem:[%s1303_s22 + $0x120] sm:$0xff] %v574_v11  ;;  %v362_v15 = vadd.f32 %v1297_v16, %v361_v13  ;;  %v410_v17 = vadd.f32 %v1297_v16, %v409_v14 }
  0xf0   : > { %654 = vst [vmem:[%s1303_s22 + $0x1a0] sm:$0xff] %v590_v12 }
  0xf1   : > { %v543_v18 = vmax.f32 %v362_v15, 0.0  ;;  %v559_v19 = vmax.f32 %v410_v17, 0.0 }
  0xf2   : > { %v457_v20 = vpop.f32.mrf.mxu2  ;;  %v505_v21 = vpop.f32.mrf.mxu3 }
  0xf3   : > { %607 = vst [vmem:[%s1303_s22 + $0x28] sm:$0xff] %v543_v18  ;;  %v458_v22 = vadd.f32 %v1297_v16, %v457_v20  ;;  %v506_v23 = vadd.f32 %v1297_v16, %v505_v21 }
  0xf4   : > { %623 = vst [vmem:[%s1303_s22 + $0xa8] sm:$0xff] %v559_v19 }
  0xf5   : > { %v575_v24 = vmax.f32 %v458_v22, 0.0  ;;  %v591_v25 = vmax.f32 %v506_v23, 0.0 }
  0xf6   : > { %v364_v26 = vpop.f32.mrf.mxu0  ;;  %v412_v27 = vpop.f32.mrf.mxu1 }
  0xf7   : > { %639 = vst [vmem:[%s1303_s22 + $0x128] sm:$0xff] %v575_v24  ;;  %v365_v28 = vadd.f32 %v1297_v16, %v364_v26  ;;  %v413_v29 = vadd.f32 %v1297_v16, %v412_v27 }
  0xf8   : > { %655 = vst [vmem:[%s1303_s22 + $0x1a8] sm:$0xff] %v591_v25 }
  0xf9   : > { %v544_v30 = vmax.f32 %v365_v28, 0.0  ;;  %v560_v31 = vmax.f32 %v413_v29, 0.0 }
  0xfa   : > { %v460_v32 = vpop.f32.mrf.mxu2  ;;  %v508_v33 = vpop.f32.mrf.mxu3 }
  0xfb   : > { %608 = vst [vmem:[%s1303_s22 + $0x30] sm:$0xff] %v544_v30  ;;  %v461_v34 = vadd.f32 %v1297_v16, %v460_v32  ;;  %v509_v35 = vadd.f32 %v1297_v16, %v508_v33 }
  0xfc   : > { %624 = vst [vmem:[%s1303_s22 + $0xb0] sm:$0xff] %v560_v31 }
  0xfd   : > { %v576_v36 = vmax.f32 %v461_v34, 0.0  ;;  %v592_v37 = vmax.f32 %v509_v35, 0.0 }
  0xfe   : > { %v367_v38 = vpop.f32.mrf.mxu0  ;;  %v415_v39 = vpop.f32.mrf.mxu1 }
  0xff   : > { %640 = vst [vmem:[%s1303_s22 + $0x130] sm:$0xff] %v576_v36  ;;  %v368_v40 = vadd.f32 %v1297_v16, %v367_v38  ;;  %v416_v41 = vadd.f32 %v1297_v16, %v415_v39 }
 0x100   : > { %656 = vst [vmem:[%s1303_s22 + $0x1b0] sm:$0xff] %v592_v37 }
 0x101   : > { %v545_v42 = vmax.f32 %v368_v40, 0.0  ;;  %v561_v43 = vmax.f32 %v416_v41, 0.0 }
 0x102   : > { %v463_v44 = vpop.f32.mrf.mxu2  ;;  %v511_v45 = vpop.f32.mrf.mxu3 }
 0x103   : > { %609 = vst [vmem:[%s1303_s22 + $0x38] sm:$0xff] %v545_v42  ;;  %v464_v46 = vadd.f32 %v1297_v16, %v463_v44  ;;  %v512_v47 = vadd.f32 %v1297_v16, %v511_v45 }
 0x104   : > { %625 = vst [vmem:[%s1303_s22 + $0xb8] sm:$0xff] %v561_v43 }
 0x105   : > { %v577_v48 = vmax.f32 %v464_v46, 0.0  ;;  %v593_v49 = vmax.f32 %v512_v47, 0.0 }
 0x106   : > { %v370_v50 = vpop.f32.mrf.mxu0  ;;  %v418_v51 = vpop.f32.mrf.mxu1 }
 0x107   : > { %641 = vst [vmem:[%s1303_s22 + $0x138] sm:$0xff] %v577_v48  ;;  %v371_v52 = vadd.f32 %v1297_v16, %v370_v50  ;;  %v419_v53 = vadd.f32 %v1297_v16, %v418_v51 }
 0x108   : > { %657 = vst [vmem:[%s1303_s22 + $0x1b8] sm:$0xff] %v593_v49 }
 0x109   : > { %v546_v54 = vmax.f32 %v371_v52, 0.0  ;;  %v562_v55 = vmax.f32 %v419_v53, 0.0 }
 0x10a   : > { %v466_v56 = vpop.f32.mrf.mxu2  ;;  %v514_v57 = vpop.f32.mrf.mxu3 }
 0x10b   : > { %610 = vst [vmem:[%s1303_s22 + $0x40] sm:$0xff] %v546_v54  ;;  %v467_v58 = vadd.f32 %v1297_v16, %v466_v56  ;;  %v515_v59 = vadd.f32 %v1297_v16, %v514_v57 }
 0x10c   : > { %626 = vst [vmem:[%s1303_s22 + $0xc0] sm:$0xff] %v562_v55 }
 0x10d   : > { %v578_v60 = vmax.f32 %v467_v58, 0.0  ;;  %v594_v61 = vmax.f32 %v515_v59, 0.0 }
 0x10e   : > { %v373_v62 = vpop.f32.mrf.mxu0  ;;  %v421_v63 = vpop.f32.mrf.mxu1 }
 0x10f   : > { %642 = vst [vmem:[%s1303_s22 + $0x140] sm:$0xff] %v578_v60  ;;  %v374_v0 = vadd.f32 %v1297_v16, %v373_v62  ;;  %v422_v1 = vadd.f32 %v1297_v16, %v421_v63 }
 0x110   : > { %658 = vst [vmem:[%s1303_s22 + $0x1c0] sm:$0xff] %v594_v61 }
 0x111   : > { %v547_v2 = vmax.f32 %v374_v0, 0.0  ;;  %v563_v3 = vmax.f32 %v422_v1, 0.0 }
 0x112   : > { %v469_v4 = vpop.f32.mrf.mxu2  ;;  %v517_v5 = vpop.f32.mrf.mxu3 }
 0x113   : > { %611 = vst [vmem:[%s1303_s22 + $0x48] sm:$0xff] %v547_v2  ;;  %v470_v6 = vadd.f32 %v1297_v16, %v469_v4  ;;  %v518_v7 = vadd.f32 %v1297_v16, %v517_v5 }
 0x114   : > { %627 = vst [vmem:[%s1303_s22 + $0xc8] sm:$0xff] %v563_v3 }
 0x115   : > { %v579_v8 = vmax.f32 %v470_v6, 0.0  ;;  %v595_v9 = vmax.f32 %v518_v7, 0.0 }
 0x116   : > { %v376_v10 = vpop.f32.mrf.mxu0  ;;  %v424_v11 = vpop.f32.mrf.mxu1 }
 0x117   : > { %643 = vst [vmem:[%s1303_s22 + $0x148] sm:$0xff] %v579_v8  ;;  %v377_v12 = vadd.f32 %v1297_v16, %v376_v10  ;;  %v425_v13 = vadd.f32 %v1297_v16, %v424_v11 }
 0x118   : > { %659 = vst [vmem:[%s1303_s22 + $0x1c8] sm:$0xff] %v595_v9 }
 0x119   : > { %v548_v14 = vmax.f32 %v377_v12, 0.0  ;;  %v564_v15 = vmax.f32 %v425_v13, 0.0 }
 0x11a   : > { %v472_v17 = vpop.f32.mrf.mxu2  ;;  %v520_v18 = vpop.f32.mrf.mxu3 }
 0x11b   : > { %612 = vst [vmem:[%s1303_s22 + $0x50] sm:$0xff] %v548_v14  ;;  %v473_v19 = vadd.f32 %v1297_v16, %v472_v17  ;;  %v521_v20 = vadd.f32 %v1297_v16, %v520_v18 }
 0x11c   : > { %628 = vst [vmem:[%s1303_s22 + $0xd0] sm:$0xff] %v564_v15 }
 0x11d   : > { %v580_v21 = vmax.f32 %v473_v19, 0.0  ;;  %v596_v22 = vmax.f32 %v521_v20, 0.0 }
 0x11e   : > { %v379_v23 = vpop.f32.mrf.mxu0  ;;  %v427_v24 = vpop.f32.mrf.mxu1 }
 0x11f   : > { %644 = vst [vmem:[%s1303_s22 + $0x150] sm:$0xff] %v580_v21  ;;  %v380_v25 = vadd.f32 %v1297_v16, %v379_v23  ;;  %v428_v26 = vadd.f32 %v1297_v16, %v427_v24 }
 0x120   : > { %660 = vst [vmem:[%s1303_s22 + $0x1d0] sm:$0xff] %v596_v22 }
 0x121   : > { %v549_v27 = vmax.f32 %v380_v25, 0.0  ;;  %v565_v28 = vmax.f32 %v428_v26, 0.0 }
 0x122   : > { %v475_v29 = vpop.f32.mrf.mxu2  ;;  %v523_v30 = vpop.f32.mrf.mxu3 }
 0x123   : > { %613 = vst [vmem:[%s1303_s22 + $0x58] sm:$0xff] %v549_v27  ;;  %v476_v31 = vadd.f32 %v1297_v16, %v475_v29  ;;  %v524_v32 = vadd.f32 %v1297_v16, %v523_v30 }
 0x124   : > { %629 = vst [vmem:[%s1303_s22 + $0xd8] sm:$0xff] %v565_v28 }
 0x125   : > { %v581_v33 = vmax.f32 %v476_v31, 0.0  ;;  %v597_v34 = vmax.f32 %v524_v32, 0.0 }
 0x126   : > { %v382_v35 = vpop.f32.mrf.mxu0  ;;  %v430_v36 = vpop.f32.mrf.mxu1 }
 0x127   : > { %645 = vst [vmem:[%s1303_s22 + $0x158] sm:$0xff] %v581_v33  ;;  %v383_v37 = vadd.f32 %v1297_v16, %v382_v35  ;;  %v431_v38 = vadd.f32 %v1297_v16, %v430_v36 }
 0x128   : > { %661 = vst [vmem:[%s1303_s22 + $0x1d8] sm:$0xff] %v597_v34 }
 0x129   : > { %v550_v39 = vmax.f32 %v383_v37, 0.0  ;;  %v566_v40 = vmax.f32 %v431_v38, 0.0 }
 0x12a   : > { %v478_v41 = vpop.f32.mrf.mxu2  ;;  %v526_v42 = vpop.f32.mrf.mxu3 }
 0x12b   : > { %614 = vst [vmem:[%s1303_s22 + $0x60] sm:$0xff] %v550_v39  ;;  %v479_v43 = vadd.f32 %v1297_v16, %v478_v41  ;;  %v527_v44 = vadd.f32 %v1297_v16, %v526_v42 }
 0x12c   : > { %630 = vst [vmem:[%s1303_s22 + $0xe0] sm:$0xff] %v566_v40 }
 0x12d   : > { %v582_v45 = vmax.f32 %v479_v43, 0.0  ;;  %v598_v46 = vmax.f32 %v527_v44, 0.0 }
 0x12e   : > { %v385_v47 = vpop.f32.mrf.mxu0  ;;  %v433_v48 = vpop.f32.mrf.mxu1 }
 0x12f   : > { %646 = vst [vmem:[%s1303_s22 + $0x160] sm:$0xff] %v582_v45  ;;  %v386_v49 = vadd.f32 %v1297_v16, %v385_v47  ;;  %v434_v50 = vadd.f32 %v1297_v16, %v433_v48 }
 0x130   : > { %662 = vst [vmem:[%s1303_s22 + $0x1e0] sm:$0xff] %v598_v46 }
 0x131   : > { %v551_v51 = vmax.f32 %v386_v49, 0.0  ;;  %v567_v52 = vmax.f32 %v434_v50, 0.0 }
 0x132   : > { %v481_v53 = vpop.f32.mrf.mxu2  ;;  %v529_v54 = vpop.f32.mrf.mxu3 }
 0x133   : > { %615 = vst [vmem:[%s1303_s22 + $0x68] sm:$0xff] %v551_v51  ;;  %v482_v55 = vadd.f32 %v1297_v16, %v481_v53  ;;  %v530_v56 = vadd.f32 %v1297_v16, %v529_v54 }
 0x134   : > { %631 = vst [vmem:[%s1303_s22 + $0xe8] sm:$0xff] %v567_v52 }
 0x135   : > { %v583_v57 = vmax.f32 %v482_v55, 0.0  ;;  %v599_v58 = vmax.f32 %v530_v56, 0.0 }
 0x136   : > { %v388_v59 = vpop.f32.mrf.mxu0  ;;  %v436_v60 = vpop.f32.mrf.mxu1 }
 0x137   : > { %647 = vst [vmem:[%s1303_s22 + $0x168] sm:$0xff] %v583_v57  ;;  %v389_v61 = vadd.f32 %v1297_v16, %v388_v59  ;;  %v437_v62 = vadd.f32 %v1297_v16, %v436_v60 }
 0x138   : > { %663 = vst [vmem:[%s1303_s22 + $0x1e8] sm:$0xff] %v599_v58 }
 0x139   : > { %v552_v63 = vmax.f32 %v389_v61, 0.0  ;;  %v568_v0 = vmax.f32 %v437_v62, 0.0 }
 0x13a   : > { %v484_v1 = vpop.f32.mrf.mxu2  ;;  %v532_v2 = vpop.f32.mrf.mxu3 }
 0x13b   : > { %616 = vst [vmem:[%s1303_s22 + $0x70] sm:$0xff] %v552_v63  ;;  %v485_v3 = vadd.f32 %v1297_v16, %v484_v1  ;;  %v533_v4 = vadd.f32 %v1297_v16, %v532_v2 }
 0x13c   : > { %632 = vst [vmem:[%s1303_s22 + $0xf0] sm:$0xff] %v568_v0 }
 0x13d   : > { %v584_v5 = vmax.f32 %v485_v3, 0.0  ;;  %v600_v6 = vmax.f32 %v533_v4, 0.0 }
 0x13e   : > { %v391_v7 = vpop.f32.mrf.mxu0  ;;  %v439_v8 = vpop.f32.mrf.mxu1 }
 0x13f   : > { %648 = vst [vmem:[%s1303_s22 + $0x170] sm:$0xff] %v584_v5  ;;  %v392_v9 = vadd.f32 %v1297_v16, %v391_v7  ;;  %v440_v10 = vadd.f32 %v1297_v16, %v439_v8 }
 0x140   : > { %664 = vst [vmem:[%s1303_s22 + $0x1f0] sm:$0xff] %v600_v6 }
 0x141   : > { %v553_v11 = vmax.f32 %v392_v9, 0.0  ;;  %v569_v12 = vmax.f32 %v440_v10, 0.0 }
 0x142   : > { %v487_v13 = vpop.f32.mrf.mxu2  ;;  %v535_v14 = vpop.f32.mrf.mxu3 }
 0x143   : > { %617 = vst [vmem:[%s1303_s22 + $0x78] sm:$0xff] %v553_v11  ;;  %v488_v15 = vadd.f32 %v1297_v16, %v487_v13  ;;  %v536_v17 = vadd.f32 %v1297_v16, %v535_v14 }
 0x144   : > { %633 = vst [vmem:[%s1303_s22 + $0xf8] sm:$0xff] %v569_v12 }
 0x145   : > { %v585_v18 = vmax.f32 %v488_v15, 0.0  ;;  %v601_v19 = vmax.f32 %v536_v17, 0.0 }
 0x147   : > { %649 = vst [vmem:[%s1303_s22 + $0x178] sm:$0xff] %v585_v18 }
 0x148   : > { %665 = vst [vmem:[%s1303_s22 + $0x1f8] sm:$0xff] %v601_v19 }
 0x149   : > { %1023 = shalt.err (!%p1020_p0)
}
 0x14a   : > { %s1087_s6 = smov 128   ;;  %s1088_s7 = smov 8  }
 0x14b   : > { %864 = dma.vmem_to_hbm [thread:$0]  (%p1191_p5), %s681_s15, 8192, %s683_s19, %s667_s24, %s1087_s6, %s1087_s6, %s1088_s7  }
 0x14c PF: > { %s697_s1 = sand.u32 1, %s1062_s12   ;;  %p875_p3 = pnand %p795_p11, %p1158_p6 }
 0x14d   : > { %s698_s20 = scalar_lea.sflag [#allocation4], %s697_s1 }
 0x14e   : > { %p876_p7 = pneg %p875_p3 }
 0x150   : > { %1057 = dma.done.wait (%p876_p7), %s698_s20, 8192  }
 0x151   : > { %1059 = vsyncadd (%p876_p7), %s698_s20, 4294959104  ;;  %s20_s17 = sadd.s32 1, %s1082_s17   ;;  %s1485_s12 = smov %s1066_s13 }
 0x152   : > { %p17_p9 = scmp.ge.s32.totalorder %s20_s17, 4   ;;  %s1486_s13 = smov %s1070_s14 }
 0x153   : > { %s1487_s14 = smov %s1200_s18  ;;  %s1488_s15 = smov %s1078_s16 }
 0x154   : > { %s1489_s16 = smov %s1491_s5  ;;  %19 = sbr.rel (!%p17_p9) target bundleno = 9 (0x9), region = 85 }
 0x159   :  { %704 = vsyncpa [#allocation3], 1 }
 0x15a   :  { %706 = vsyncpa [#allocation3 + $0x1], 1 }
 0x15b   :  { %707 = vsyncpa [#allocation6], 1 }
 0x15c   :  { %708 = vsyncpa [#allocation4], 1 }
 0x15d   :  { %710 = vsyncpa [#allocation4 + $0x1], 1 }

</bundles_post_ra>
